<compile_context>
chip_gen: v5e
topology: v5e:2x2
jax: 0.10.0
libtpu: 0.0.40
codegen_flags: <defaults>
</compile_context>

<pallas_src>
import jax
import jax.numpy as jnp
from jax.experimental import pallas as pl
from jax.experimental.pallas import tpu as pltpu


def _fusion_preact_kernel(x_ref, w1_ref, b1_ref, w2_ref, b2_ref, o_ref):
    # ReLU directly on the input tile, cast once to bf16 for the MXU
    # (no separate full-tile f32 copy of x kept live across both matmuls).
    h = jnp.maximum(x_ref[...], 0.0).astype(jnp.bfloat16)            # ReLU 1
    h = jnp.dot(h, w1_ref[...], preferred_element_type=jnp.float32)  # Linear 1
    h = jnp.maximum(h + b1_ref[...], 0.0)                            # bias + ReLU 2 (f32)
    h = jnp.dot(h.astype(jnp.bfloat16), w2_ref[...],
                preferred_element_type=jnp.float32)                  # Linear 2
    h = h + b2_ref[...]
    o_ref[...] = (h + x_ref[...].astype(jnp.float32)).astype(o_ref.dtype)


def _round_up(a, b):
    return ((a + b - 1) // b) * b


def _cdiv(a, b):
    return -(-a // b)


def anycam_pose_token_fusion_preact(x, w1, b1, w2, b2):
    """x: (..., chn); w1, w2: (chn, chn) in PyTorch (out, in) layout; b: (chn,).

    Note: matmuls use bf16 MXU operands with f32 accumulation — a deliberate
    precision/speed tradeoff vs. the f32 PyTorch reference.
    """
    orig_shape = x.shape
    chn = orig_shape[-1]
    x2d = x.reshape(-1, chn)
    M = x2d.shape[0]

    LANES = 128
    pack = (chn < LANES) and (LANES % chn == 0)

    if pack:
        # Pack k tokens per 128-lane row; block-diagonal weights.
        k = LANES // chn
        C = LANES
        Mk = _round_up(M, k)
        if Mk != M:
            x2d = jnp.pad(x2d, ((0, Mk - M), (0, 0)))
        xk = x2d.reshape(Mk // k, C)
        Mrows = Mk // k

        def prep_w(w):
            wt = w.T.astype(jnp.float32)                     # (in, out)
            wbd = jnp.kron(jnp.eye(k, dtype=jnp.float32), wt)  # (128, 128) block-diag
            return wbd.astype(jnp.bfloat16)

        def prep_b(b):
            return jnp.tile(b.astype(jnp.float32), k).reshape(1, C)
    else:
        C = _round_up(chn, LANES)
        if C != chn:
            # Explicit zero channel padding (keeps padded lanes exactly zero).
            xk = jnp.pad(x2d, ((0, 0), (0, C - chn)))
        else:
            xk = x2d                                          # no wrapper copy
        Mrows = M

        def prep_w(w):
            wt = w.T.astype(jnp.float32)
            if C != chn:
                wt = jnp.pad(wt, ((0, C - chn), (0, C - chn)))
            return wt.astype(jnp.bfloat16)

        def prep_b(b):
            bb = b.astype(jnp.float32)
            if C != chn:
                bb = jnp.pad(bb, (0, C - chn))
            return bb.reshape(1, C)

    w1p, w2p = prep_w(w1), prep_w(w2)
    b1p, b2p = prep_b(b1), prep_b(b2)

    # Row tile: balanced, minimally padded step count (even -> both v7x TCs busy).
    if Mrows <= 8:
        tm = Mrows
    else:
        n_steps = max(2, _cdiv(Mrows, 512))
        n_steps += n_steps % 2
        tm = _round_up(_cdiv(Mrows, n_steps), 8)
        tm = min(tm, _round_up(Mrows, 8))

    itemsize = jnp.dtype(x.dtype).itemsize

    def vmem_needed(t):
        io = 2 * 2 * t * C * itemsize          # double-buffered x-in + out tiles
        wts = 2 * C * C * 2 + 2 * C * 4        # single-buffered bf16 weights + f32 biases
        live = 3 * t * C * 4                   # f32 intermediates in the body
        return io + wts + live

    try:
        vmem_phys = int(pltpu.get_tpu_info().vmem_capacity_bytes)
    except Exception:
        vmem_phys = 64 * 1024 * 1024           # conservative (v7x per-TC) fallback
    budget = int(vmem_phys * 0.85)             # leave headroom for compiler scratch
    while vmem_needed(tm) > budget and tm > 8:
        tm = max(8, _round_up(tm // 2, 8))
    vmem_limit = min(budget, max(2 * vmem_needed(tm), 32 * 1024 * 1024))

    grid = (_cdiv(Mrows, tm),)

    cost = pl.CostEstimate(
        flops=2 * 2 * Mrows * C * C,                         # two (Mrows,C)x(C,C) matmuls
        transcendentals=0,
        bytes_accessed=(2 * Mrows * C * itemsize             # x in + out
                        + 2 * C * C * 2                      # two bf16 weights
                        + 2 * C * 4),                        # two f32 biases
    )

    def _run(single_buffer_weights):
        def wspec(shape):
            imap = lambda i: (0, 0)
            if single_buffer_weights:
                try:
                    return pl.BlockSpec(shape, imap, pipeline_mode=pl.Buffered(1))
                except Exception:
                    return pl.BlockSpec(shape, imap)
            return pl.BlockSpec(shape, imap)

        return pl.pallas_call(
            _fusion_preact_kernel,
            out_shape=jax.ShapeDtypeStruct((Mrows, C), x.dtype),
            grid_spec=pltpu.PrefetchScalarGridSpec(
                num_scalar_prefetch=0,
                grid=grid,
                in_specs=[
                    pl.BlockSpec((tm, C), lambda i: (i, 0)),   # x row tile
                    wspec((C, C)),                             # W1^T (resident)
                    wspec((1, C)),                             # b1
                    wspec((C, C)),                             # W2^T (resident)
                    wspec((1, C)),                             # b2
                ],
                out_specs=pl.BlockSpec((tm, C), lambda i: (i, 0)),
            ),
            compiler_params=pltpu.CompilerParams(
                dimension_semantics=("parallel",),
                vmem_limit_bytes=int(vmem_limit),
            ),
            cost_estimate=cost,
        )(xk, w1p, b1p, w2p, b2p)

    try:
        out2d = _run(True)
    except Exception:
        # Fallback: default double-buffered grid-invariant operands.
        out2d = _run(False)

    if pack:
        out = out2d.reshape(Mk, chn)
        if Mk != M:
            out = out[:M]
    else:
        out = out2d[:, :chn] if C != chn else out2d
    return out.reshape(orig_shape)


def _reference(x, w1, b1, w2, b2):
    """Pure-JAX f32 reference mirroring the PyTorch forward exactly."""
    h = jnp.maximum(x, 0.0)
    h = h @ w1.T + b1
    h = jnp.maximum(h, 0.0)
    h = h @ w2.T + b2
    return h + x


if __name__ == "__main__":
    # Token tensor (batch, seq, chn), small shapes consistent with the module.
    batch, seq, chn = 2, 8, 32
    key = jax.random.PRNGKey(0)
    k_x, k_w1, k_b1, k_w2, k_b2 = jax.random.split(key, 5)

    x = jax.random.normal(k_x, (batch, seq, chn), dtype=jnp.float32)

    # Deterministic parameter init (kaiming-uniform-ish bound, like nn.Linear).
    bound = 1.0 / (chn ** 0.5)
    w1 = jax.random.uniform(k_w1, (chn, chn), jnp.float32, -bound, bound)
    b1 = jax.random.uniform(k_b1, (chn,), jnp.float32, -bound, bound)
    w2 = jax.random.uniform(k_w2, (chn, chn), jnp.float32, -bound, bound)
    b2 = jax.random.uniform(k_b2, (chn,), jnp.float32, -bound, bound)

    out = anycam_pose_token_fusion_preact(x, w1, b1, w2, b2)
    out = jax.block_until_ready(out)

    ref = _reference(x, w1, b1, w2, b2)
    assert out.shape == x.shape
    # bf16 MXU operands with f32 accumulation -> loosened tolerance vs f32 ref.
    assert jnp.allclose(out, ref, atol=3e-2, rtol=3e-2), (
        "mismatch vs reference; max abs err = "
        f"{float(jnp.max(jnp.abs(out - ref)))}")

    print("KERNEL_OK")
</pallas_src>

<mosaic_0001>
module attributes {stable_mosaic.version = 11 : i64} {
  func.func @_fusion_preact_kernel(%arg0: i32, %arg1: memref<4x128xf32, #tpu.memory_space<vmem>>, %arg2: memref<128x128xbf16, #tpu.memory_space<vmem>>, %arg3: memref<1x128xf32, #tpu.memory_space<vmem>>, %arg4: memref<128x128xbf16, #tpu.memory_space<vmem>>, %arg5: memref<1x128xf32, #tpu.memory_space<vmem>>, %arg6: memref<4x128xf32, #tpu.memory_space<vmem>>) attributes {dimension_semantics = [#tpu.dimension_semantics<parallel>], iteration_bounds = array<i64: 1>, scalar_prefetch = 0 : i64, scratch_operands = 0 : i64, tpu.core_type = #tpu.core_type<tc>, window_params = [{transform_indices = @transform_0, window_bounds = array<i64: 4, 128>}, {pipeline_mode = #tpu.pipeline_mode<synchronous>, transform_indices = @transform_1, window_bounds = array<i64: 128, 128>}, {pipeline_mode = #tpu.pipeline_mode<synchronous>, transform_indices = @transform_2, window_bounds = array<i64: 1, 128>}, {pipeline_mode = #tpu.pipeline_mode<synchronous>, transform_indices = @transform_3, window_bounds = array<i64: 128, 128>}, {pipeline_mode = #tpu.pipeline_mode<synchronous>, transform_indices = @transform_4, window_bounds = array<i64: 1, 128>}, {transform_indices = @transform_5, window_bounds = array<i64: 4, 128>}]} {
    %c0 = arith.constant 0 : index
    %c0_0 = arith.constant 0 : index
    %0 = vector.load %arg1[%c0, %c0_0] : memref<4x128xf32, #tpu.memory_space<vmem>>, vector<4x128xf32>
    %cst = arith.constant 0.000000e+00 : f32
    %1 = vector.broadcast %cst : f32 to vector<4x128xf32>
    %2 = arith.maximumf %0, %1 : vector<4x128xf32>
    %3 = arith.truncf %2 : vector<4x128xf32> to vector<4x128xbf16>
    %c0_1 = arith.constant 0 : index
    %c0_2 = arith.constant 0 : index
    %4 = vector.load %arg2[%c0_1, %c0_2] : memref<128x128xbf16, #tpu.memory_space<vmem>>, vector<128x128xbf16>
    %cst_3 = arith.constant dense<0.000000e+00> : vector<4x128xf32>
    %5 = tpu.matmul %3, %4, %cst_3 {dimension_numbers = #tpu.dot_dimension_numbers<[1], [0], [0], [1], [0, 0, 1, 1], [], []>} : vector<4x128xbf16>, vector<128x128xbf16>, vector<4x128xf32> -> vector<4x128xf32>
    %c0_4 = arith.constant 0 : index
    %c0_5 = arith.constant 0 : index
    %6 = vector.load %arg3[%c0_4, %c0_5] : memref<1x128xf32, #tpu.memory_space<vmem>>, vector<1x128xf32>
    %7 = vector.broadcast %6 : vector<1x128xf32> to vector<4x128xf32>
    %8 = arith.addf %5, %7 : vector<4x128xf32>
    %cst_6 = arith.constant 0.000000e+00 : f32
    %9 = vector.broadcast %cst_6 : f32 to vector<4x128xf32>
    %10 = arith.maximumf %8, %9 : vector<4x128xf32>
    %11 = arith.truncf %10 : vector<4x128xf32> to vector<4x128xbf16>
    %c0_7 = arith.constant 0 : index
    %c0_8 = arith.constant 0 : index
    %12 = vector.load %arg4[%c0_7, %c0_8] : memref<128x128xbf16, #tpu.memory_space<vmem>>, vector<128x128xbf16>
    %cst_9 = arith.constant dense<0.000000e+00> : vector<4x128xf32>
    %13 = tpu.matmul %11, %12, %cst_9 {dimension_numbers = #tpu.dot_dimension_numbers<[1], [0], [0], [1], [0, 0, 1, 1], [], []>} : vector<4x128xbf16>, vector<128x128xbf16>, vector<4x128xf32> -> vector<4x128xf32>
    %c0_10 = arith.constant 0 : index
    %c0_11 = arith.constant 0 : index
    %14 = vector.load %arg5[%c0_10, %c0_11] : memref<1x128xf32, #tpu.memory_space<vmem>>, vector<1x128xf32>
    %15 = vector.broadcast %14 : vector<1x128xf32> to vector<4x128xf32>
    %16 = arith.addf %13, %15 : vector<4x128xf32>
    %c0_12 = arith.constant 0 : index
    %c0_13 = arith.constant 0 : index
    %17 = vector.load %arg1[%c0_12, %c0_13] : memref<4x128xf32, #tpu.memory_space<vmem>>, vector<4x128xf32>
    %18 = arith.addf %16, %17 : vector<4x128xf32>
    %c0_14 = arith.constant 0 : index
    %c0_15 = arith.constant 0 : index
    %19 = vector.load %arg6[%c0_14, %c0_15] : memref<4x128xf32, #tpu.memory_space<vmem>>, vector<4x128xf32>
    tpu.vector_store %arg6[%c0_14, %c0_15], %18 {strides = array<i32>} : memref<4x128xf32, #tpu.memory_space<vmem>>, vector<4x128xf32>,
    return
  }
  func.func @transform_0(%arg0: i32) -> (i32, i32) {
    %c0_i32 = arith.constant 0 : i32
    %c0_i32_0 = arith.constant 0 : i32
    return %arg0, %c0_i32 : i32, i32
  }
  func.func @transform_1(%arg0: i32) -> (i32, i32) {
    %c0_i32 = arith.constant 0 : i32
    %c0_i32_0 = arith.constant 0 : i32
    %c0_i32_1 = arith.constant 0 : i32
    return %c0_i32, %c0_i32_0 : i32, i32
  }
  func.func @transform_2(%arg0: i32) -> (i32, i32) {
    %c0_i32 = arith.constant 0 : i32
    %c0_i32_0 = arith.constant 0 : i32
    %c0_i32_1 = arith.constant 0 : i32
    return %c0_i32, %c0_i32_0 : i32, i32
  }
  func.func @transform_3(%arg0: i32) -> (i32, i32) {
    %c0_i32 = arith.constant 0 : i32
    %c0_i32_0 = arith.constant 0 : i32
    %c0_i32_1 = arith.constant 0 : i32
    return %c0_i32, %c0_i32_0 : i32, i32
  }
  func.func @transform_4(%arg0: i32) -> (i32, i32) {
    %c0_i32 = arith.constant 0 : i32
    %c0_i32_0 = arith.constant 0 : i32
    %c0_i32_1 = arith.constant 0 : i32
    return %c0_i32, %c0_i32_0 : i32, i32
  }
  func.func @transform_5(%arg0: i32) -> (i32, i32) {
    %c0_i32 = arith.constant 0 : i32
    %c0_i32_0 = arith.constant 0 : i32
    return %arg0, %c0_i32 : i32, i32
  }
}

module attributes {stable_mosaic.version = 11 : i64} {
  func.func @_fusion_preact_kernel(%arg0: i32, %arg1: memref<4x128xf32, #tpu.memory_space<vmem>>, %arg2: memref<128x128xbf16, #tpu.memory_space<vmem>>, %arg3: memref<1x128xf32, #tpu.memory_space<vmem>>, %arg4: memref<128x128xbf16, #tpu.memory_space<vmem>>, %arg5: memref<1x128xf32, #tpu.memory_space<vmem>>, %arg6: memref<4x128xf32, #tpu.memory_space<vmem>>) attributes {dimension_semantics = [#tpu.dimension_semantics<parallel>], iteration_bounds = array<i64: 1>, scalar_prefetch = 0 : i64, scratch_operands = 0 : i64, tpu.core_type = #tpu.core_type<tc>, window_params = [{transform_indices = @transform_0, window_bounds = array<i64: 4, 128>}, {pipeline_mode = #tpu.pipeline_mode<synchronous>, transform_indices = @transform_1, window_bounds = array<i64: 128, 128>}, {pipeline_mode = #tpu.pipeline_mode<synchronous>, transform_indices = @transform_2, window_bounds = array<i64: 1, 128>}, {pipeline_mode = #tpu.pipeline_mode<synchronous>, transform_indices = @transform_3, window_bounds = array<i64: 128, 128>}, {pipeline_mode = #tpu.pipeline_mode<synchronous>, transform_indices = @transform_4, window_bounds = array<i64: 1, 128>}, {transform_indices = @transform_5, window_bounds = array<i64: 4, 128>}]} {
    %c0 = arith.constant 0 : index
    %c0_0 = arith.constant 0 : index
    %0 = vector.load %arg1[%c0, %c0_0] : memref<4x128xf32, #tpu.memory_space<vmem>>, vector<4x128xf32>
    %cst = arith.constant 0.000000e+00 : f32
    %1 = vector.broadcast %cst : f32 to vector<4x128xf32>
    %2 = arith.maximumf %0, %1 : vector<4x128xf32>
    %3 = arith.truncf %2 : vector<4x128xf32> to vector<4x128xbf16>
    %c0_1 = arith.constant 0 : index
    %c0_2 = arith.constant 0 : index
    %4 = vector.load %arg2[%c0_1, %c0_2] : memref<128x128xbf16, #tpu.memory_space<vmem>>, vector<128x128xbf16>
    %cst_3 = arith.constant dense<0.000000e+00> : vector<4x128xf32>
    %5 = tpu.matmul %3, %4, %cst_3 {dimension_numbers = #tpu.dot_dimension_numbers<[1], [0], [0], [1], [0, 0, 1, 1], [], []>} : vector<4x128xbf16>, vector<128x128xbf16>, vector<4x128xf32> -> vector<4x128xf32>
    %c0_4 = arith.constant 0 : index
    %c0_5 = arith.constant 0 : index
    %6 = vector.load %arg3[%c0_4, %c0_5] : memref<1x128xf32, #tpu.memory_space<vmem>>, vector<1x128xf32>
    %7 = vector.broadcast %6 : vector<1x128xf32> to vector<4x128xf32>
    %8 = arith.addf %5, %7 : vector<4x128xf32>
    %cst_6 = arith.constant 0.000000e+00 : f32
    %9 = vector.broadcast %cst_6 : f32 to vector<4x128xf32>
    %10 = arith.maximumf %8, %9 : vector<4x128xf32>
    %11 = arith.truncf %10 : vector<4x128xf32> to vector<4x128xbf16>
    %c0_7 = arith.constant 0 : index
    %c0_8 = arith.constant 0 : index
    %12 = vector.load %arg4[%c0_7, %c0_8] : memref<128x128xbf16, #tpu.memory_space<vmem>>, vector<128x128xbf16>
    %cst_9 = arith.constant dense<0.000000e+00> : vector<4x128xf32>
    %13 = tpu.matmul %11, %12, %cst_9 {dimension_numbers = #tpu.dot_dimension_numbers<[1], [0], [0], [1], [0, 0, 1, 1], [], []>} : vector<4x128xbf16>, vector<128x128xbf16>, vector<4x128xf32> -> vector<4x128xf32>
    %c0_10 = arith.constant 0 : index
    %c0_11 = arith.constant 0 : index
    %14 = vector.load %arg5[%c0_10, %c0_11] : memref<1x128xf32, #tpu.memory_space<vmem>>, vector<1x128xf32>
    %15 = vector.broadcast %14 : vector<1x128xf32> to vector<4x128xf32>
    %16 = arith.addf %13, %15 : vector<4x128xf32>
    %c0_12 = arith.constant 0 : index
    %c0_13 = arith.constant 0 : index
    %17 = vector.load %arg1[%c0_12, %c0_13] : memref<4x128xf32, #tpu.memory_space<vmem>>, vector<4x128xf32>
    %18 = arith.addf %16, %17 : vector<4x128xf32>
    %c0_14 = arith.constant 0 : index
    %c0_15 = arith.constant 0 : index
    %19 = vector.load %arg6[%c0_14, %c0_15] : memref<4x128xf32, #tpu.memory_space<vmem>>, vector<4x128xf32>
    tpu.vector_store %arg6[%c0_14, %c0_15], %18 {strides = array<i32>} : memref<4x128xf32, #tpu.memory_space<vmem>>, vector<4x128xf32>,
    return
  }
  func.func @transform_0(%arg0: i32) -> (i32, i32) {
    %c0_i32 = arith.constant 0 : i32
    %c0_i32_0 = arith.constant 0 : i32
    return %arg0, %c0_i32 : i32, i32
  }
  func.func @transform_1(%arg0: i32) -> (i32, i32) {
    %c0_i32 = arith.constant 0 : i32
    %c0_i32_0 = arith.constant 0 : i32
    %c0_i32_1 = arith.constant 0 : i32
    return %c0_i32, %c0_i32_0 : i32, i32
  }
  func.func @transform_2(%arg0: i32) -> (i32, i32) {
    %c0_i32 = arith.constant 0 : i32
    %c0_i32_0 = arith.constant 0 : i32
    %c0_i32_1 = arith.constant 0 : i32
    return %c0_i32, %c0_i32_0 : i32, i32
  }
  func.func @transform_3(%arg0: i32) -> (i32, i32) {
    %c0_i32 = arith.constant 0 : i32
    %c0_i32_0 = arith.constant 0 : i32
    %c0_i32_1 = arith.constant 0 : i32
    return %c0_i32, %c0_i32_0 : i32, i32
  }
  func.func @transform_4(%arg0: i32) -> (i32, i32) {
    %c0_i32 = arith.constant 0 : i32
    %c0_i32_0 = arith.constant 0 : i32
    %c0_i32_1 = arith.constant 0 : i32
    return %c0_i32, %c0_i32_0 : i32, i32
  }
  func.func @transform_5(%arg0: i32) -> (i32, i32) {
    %c0_i32 = arith.constant 0 : i32
    %c0_i32_0 = arith.constant 0 : i32
    return %arg0, %c0_i32 : i32, i32
  }
}

</mosaic_0001>

<bundles_post_ra>
// kernel: tpu_custom_call.1
= control target key start
LH: loop header
LB: loop body
LE: loop exit
PB: predicated region body
PF: predicated region fallthrough
CT: control target
= control target key end

     0   :  { %10 = vsyncpa [#allocation3], 0  ;;  %s497_s0 = inlined_call_operand.hbm [shape: f32[4,128], index: 0, kind: input, shape index: {}]   ;;  %s498_s1 = inlined_call_operand.hbm [shape: bf16[128,128], index: 1, kind: input, shape index: {}]   ;;  %s499_s2 = inlined_call_operand.vmem [shape: f32[1,128], index: 2, kind: input, shape index: {}]   ;;  %s500_s3 = inlined_call_operand.hbm [shape: bf16[128,128], index: 3, kind: input, shape index: {}]   ;;  %s501_s4 = inlined_call_operand.vmem [shape: f32[1,128], index: 4, kind: input, shape index: {}]   ;;  %s502_s5 = inlined_call_operand.hbm [shape: f32[4,128], index: 5, kind: output, shape index: {}]  }
   0x1   :  { %11 = vsyncpa [#allocation6], 0  ;;  %s28_s20 = sshll.u32 %s498_s1, 4  ;;  %s29_s20 = int_to_ptr.hbm [resolvable:$true] %s28_s20 }
   0x2   :  { %12 = vsyncpa [#allocation4], 0  ;;  %s443_s21 = smov [#allocation5]   ;;  %s18_s25 = sshll.u32 %s497_s0, 4  ;;  %s19_s25 = int_to_ptr.hbm [resolvable:$true] %s18_s25 }
   0x3   :  { %s30_s22 = sshll.u32 %s443_s21, 4  ;;  %s444_s26 = smov 64   ;;  %s31_s22 = int_to_ptr.vmem [resolvable:$true] %s30_s22 }
   0x4   :  { %s445_s27 = smov 4   ;;  %s446_s28 = smov [#allocation2]  }
   0x5   :  { %36 = dma.hbm_to_vmem [thread:$0]  %s29_s20, 1024, %s31_s22, [#allocation6], %s444_s26, %s444_s26, %s445_s27  }
   0x6   :  { %s20_s29 = sshll.u32 %s446_s28, 4  ;;  %s43_s7 = sshll.u32 %s500_s3, 4  ;;  %s21_s29 = int_to_ptr.vmem [resolvable:$true] %s20_s29  ;;  %s44_s7 = int_to_ptr.hbm [resolvable:$true] %s43_s7 }
   0x7   :  { %23 = dma.hbm_to_vmem [thread:$0]  %s19_s25, 64, %s21_s29, [#allocation3]  }
   0x8   :  { %s447_s1 = smov [#allocation7]  }
   0x9   :  { %s45_s8 = sshll.u32 %s447_s1, 4  ;;  %s46_s8 = int_to_ptr.vmem [resolvable:$true] %s45_s8 }
   0xa   :  { %51 = dma.hbm_to_vmem [thread:$0]  %s44_s7, 1024, %s46_s8, [#allocation6], %s444_s26, %s444_s26, %s445_s27  }
   0xb   :  { %437 = dma.done.wait [#allocation3], 64  }
   0xc   :  { %438 = vsyncadd [#allocation3], 4294967232 }
   0xd   :  { %439 = dma.done.wait [#allocation6], 2048  }
   0xe   :  { %440 = vsyncadd [#allocation6], 4294965248  ;;  %v324_v0 = vld [vmem:[#allocation5 + $0x38] sm:$0xff]  ;;  %v323_v1 = vld [vmem:[#allocation5 + $0x30] sm:$0xff]  ;;  %s448_s11 = smov [#allocation8]   ;;  %s242_s15 = sshll.u32 %s502_s5, 4  ;;  %s243_s15 = int_to_ptr.hbm [resolvable:$true] %s242_s15 }
   0xf   :  { %137 = vmatpush.bf16.msra.mxu0 %v324_v0  ;;  %v332_v2 = vld [vmem:[#allocation7 + $0x38] sm:$0xff]  ;;  %v331_v3 = vld [vmem:[#allocation7 + $0x30] sm:$0xff]  ;;  %v322_v4 = vld [vmem:[#allocation5 + $0x28] sm:$0xff]  ;;  %s240_s12 = sshll.u32 %s448_s11, 4  ;;  %s241_s12 = int_to_ptr.vmem [resolvable:$true] %s240_s12 }
  0x10   :  { %220 = vmatpush.bf16.msra.mxu1 %v332_v2  ;;  %v330_v5 = vld [vmem:[#allocation7 + $0x28] sm:$0xff]  ;;  %v321_v6 = vld [vmem:[#allocation5 + $0x20] sm:$0xff]  ;;  %v320_v8 = vld [vmem:[#allocation5 + $0x18] sm:$0xff] }
  0x11   :  { %v329_v7 = vld [vmem:[#allocation7 + $0x20] sm:$0xff]  ;;  %v328_v9 = vld [vmem:[#allocation7 + $0x18] sm:$0xff]  ;;  %v319_v10 = vld [vmem:[#allocation5 + $0x10] sm:$0xff] }
  0x12   :  { %v327_v11 = vld [vmem:[#allocation7 + $0x10] sm:$0xff]  ;;  %v318_v12 = vld [vmem:[#allocation5 + $0x8] sm:$0xff]  ;;  %v66_v13 = vld [vmem:[#allocation2] sm:$0xf] }
  0x13   :  { %138 = vmatpush.bf16.msra.mxu0 %v323_v1  ;;  %v67_v14 = vmax.f32 %v66_v13, 0.0  ;;  %v317_v15 = vld [vmem:[#allocation5] sm:$0xff]  ;;  %v326_v17 = vld [vmem:[#allocation7 + $0x8] sm:$0xff]  ;;  %v339_v19 = vld [vmem:[%s499_s2] ss:$0 sm:$0xff] }
  0x14   :  { %221 = vmatpush.bf16.msra.mxu1 %v331_v3  ;;  %v325_v18 = vld [vmem:[#allocation7] sm:$0xff]  ;;  %v340_v25 = vld [vmem:[%s501_s4] ss:$0 sm:$0xff] }
  0x15   :  { %v68_v16 = vpack.c.bf16 %v67_v14, %v67_v14 }
  0x17   :  { %139 = vmatpush.bf16.msra.mxu0 %v322_v4 }
  0x18   :  { %222 = vmatpush.bf16.msra.mxu1 %v330_v5 }
  0x1b   :  { %140 = vmatpush.bf16.msra.mxu0 %v321_v6 }
  0x1c   :  { %223 = vmatpush.bf16.msra.mxu1 %v329_v7 }
  0x1f   :  { %141 = vmatpush.bf16.msra.mxu0 %v320_v8 }
  0x20   :  { %224 = vmatpush.bf16.msra.mxu1 %v328_v9 }
  0x23   :  { %142 = vmatpush.bf16.msra.mxu0 %v319_v10 }
  0x24   :  { %225 = vmatpush.bf16.msra.mxu1 %v327_v11 }
  0x27   :  { %143 = vmatpush.bf16.msra.mxu0 %v318_v12 }
  0x28   :  { %226 = vmatpush.bf16.msra.mxu1 %v326_v17 }
  0x2b   :  { %144 = vmatpush.bf16.msra.mxu0 %v317_v15 }
  0x2c   :  { %227 = vmatpush.bf16.msra.mxu1 %v325_v18 }
  0x2e   :  { %145 = vmatmul.bf16.vlgmr.msra.gmra.mxu0 %v68_v16 }
  0xab   :  { %v146_v20 = vpop.f32.mrf.mxu0 }
  0xac   :  { %v147_v21 = vadd.f32 %v339_v19, %v146_v20 }
  0xae   :  { %v150_v22 = vmax.f32 %v147_v21, 0.0 }
  0xb0   :  { %v151_v23 = vpack.c.bf16 %v150_v22, %v150_v22 }
  0xb2   :  { %228 = vmatmul.bf16.vlgmr.msra.gmra.mxu1 %v151_v23 }
  0xb3   :  { %v148_v24 = vpop.f32.mrf.mxu0 }
 0x12f   :  { %v229_v26 = vpop.f32.mrf.mxu1 }
 0x130   :  { %v230_v27 = vadd.f32 %v340_v25, %v229_v26 }
 0x132   :  { %v233_v28 = vadd.f32 %v230_v27, %v66_v13 }
 0x134   :  { %234 = vst [vmem:[#allocation8] sm:$0xf] %v233_v28 }
 0x135   :  { %245 = dma.vmem_to_hbm [thread:$0]  %s241_s12, 64, %s243_s15, [#allocation4]  }
 0x137   :  { %v231_v29 = vpop.f32.mrf.mxu1 }
 0x138   :  { %441 = dma.done.wait [#allocation4], 64  }
 0x139   :  { %442 = vsyncadd [#allocation4], 4294967232 }
 0x13a   :  { %250 = vsyncpa [#allocation3], 1 }
 0x13b   :  { %251 = vsyncpa [#allocation6], 1 }
 0x13c   :  { %252 = vsyncpa [#allocation4], 1 }

// kernel: tpu_custom_call.1
= control target key start
LH: loop header
LB: loop body
LE: loop exit
PB: predicated region body
PF: predicated region fallthrough
CT: control target
= control target key end

     0   :  { %10 = vsyncpa [#allocation3], 0  ;;  %s497_s0 = inlined_call_operand.hbm [shape: f32[4,128], index: 0, kind: input, shape index: {}]   ;;  %s498_s1 = inlined_call_operand.hbm [shape: bf16[128,128], index: 1, kind: input, shape index: {}]   ;;  %s499_s2 = inlined_call_operand.vmem [shape: f32[1,128], index: 2, kind: input, shape index: {}]   ;;  %s500_s3 = inlined_call_operand.hbm [shape: bf16[128,128], index: 3, kind: input, shape index: {}]   ;;  %s501_s4 = inlined_call_operand.vmem [shape: f32[1,128], index: 4, kind: input, shape index: {}]   ;;  %s502_s5 = inlined_call_operand.hbm [shape: f32[4,128], index: 5, kind: output, shape index: {}]  }
   0x1   :  { %11 = vsyncpa [#allocation6], 0  ;;  %s28_s20 = sshll.u32 %s498_s1, 4  ;;  %s29_s20 = int_to_ptr.hbm [resolvable:$true] %s28_s20 }
   0x2   :  { %12 = vsyncpa [#allocation4], 0  ;;  %s443_s21 = smov [#allocation5]   ;;  %s18_s25 = sshll.u32 %s497_s0, 4  ;;  %s19_s25 = int_to_ptr.hbm [resolvable:$true] %s18_s25 }
   0x3   :  { %s30_s22 = sshll.u32 %s443_s21, 4  ;;  %s444_s26 = smov 64   ;;  %s31_s22 = int_to_ptr.vmem [resolvable:$true] %s30_s22 }
   0x4   :  { %s445_s27 = smov 4   ;;  %s446_s28 = smov [#allocation2]  }
   0x5   :  { %36 = dma.hbm_to_vmem [thread:$0]  %s29_s20, 1024, %s31_s22, [#allocation6], %s444_s26, %s444_s26, %s445_s27  }
   0x6   :  { %s20_s29 = sshll.u32 %s446_s28, 4  ;;  %s43_s7 = sshll.u32 %s500_s3, 4  ;;  %s21_s29 = int_to_ptr.vmem [resolvable:$true] %s20_s29  ;;  %s44_s7 = int_to_ptr.hbm [resolvable:$true] %s43_s7 }
   0x7   :  { %23 = dma.hbm_to_vmem [thread:$0]  %s19_s25, 64, %s21_s29, [#allocation3]  }
   0x8   :  { %s447_s1 = smov [#allocation7]  }
   0x9   :  { %s45_s8 = sshll.u32 %s447_s1, 4  ;;  %s46_s8 = int_to_ptr.vmem [resolvable:$true] %s45_s8 }
   0xa   :  { %51 = dma.hbm_to_vmem [thread:$0]  %s44_s7, 1024, %s46_s8, [#allocation6], %s444_s26, %s444_s26, %s445_s27  }
   0xb   :  { %437 = dma.done.wait [#allocation3], 64  }
   0xc   :  { %438 = vsyncadd [#allocation3], 4294967232 }
   0xd   :  { %439 = dma.done.wait [#allocation6], 2048  }
   0xe   :  { %440 = vsyncadd [#allocation6], 4294965248  ;;  %v324_v0 = vld [vmem:[#allocation5 + $0x38] sm:$0xff]  ;;  %v323_v1 = vld [vmem:[#allocation5 + $0x30] sm:$0xff]  ;;  %s448_s11 = smov [#allocation8]   ;;  %s242_s15 = sshll.u32 %s502_s5, 4  ;;  %s243_s15 = int_to_ptr.hbm [resolvable:$true] %s242_s15 }
   0xf   :  { %137 = vmatpush.bf16.msra.mxu0 %v324_v0  ;;  %v332_v2 = vld [vmem:[#allocation7 + $0x38] sm:$0xff]  ;;  %v331_v3 = vld [vmem:[#allocation7 + $0x30] sm:$0xff]  ;;  %v322_v4 = vld [vmem:[#allocation5 + $0x28] sm:$0xff]  ;;  %s240_s12 = sshll.u32 %s448_s11, 4  ;;  %s241_s12 = int_to_ptr.vmem [resolvable:$true] %s240_s12 }
  0x10   :  { %220 = vmatpush.bf16.msra.mxu1 %v332_v2  ;;  %v330_v5 = vld [vmem:[#allocation7 + $0x28] sm:$0xff]  ;;  %v321_v6 = vld [vmem:[#allocation5 + $0x20] sm:$0xff]  ;;  %v320_v8 = vld [vmem:[#allocation5 + $0x18] sm:$0xff] }
  0x11   :  { %v329_v7 = vld [vmem:[#allocation7 + $0x20] sm:$0xff]  ;;  %v328_v9 = vld [vmem:[#allocation7 + $0x18] sm:$0xff]  ;;  %v319_v10 = vld [vmem:[#allocation5 + $0x10] sm:$0xff] }
  0x12   :  { %v327_v11 = vld [vmem:[#allocation7 + $0x10] sm:$0xff]  ;;  %v318_v12 = vld [vmem:[#allocation5 + $0x8] sm:$0xff]  ;;  %v66_v13 = vld [vmem:[#allocation2] sm:$0xf] }
  0x13   :  { %138 = vmatpush.bf16.msra.mxu0 %v323_v1  ;;  %v67_v14 = vmax.f32 %v66_v13, 0.0  ;;  %v317_v15 = vld [vmem:[#allocation5] sm:$0xff]  ;;  %v326_v17 = vld [vmem:[#allocation7 + $0x8] sm:$0xff]  ;;  %v339_v19 = vld [vmem:[%s499_s2] ss:$0 sm:$0xff] }
  0x14   :  { %221 = vmatpush.bf16.msra.mxu1 %v331_v3  ;;  %v325_v18 = vld [vmem:[#allocation7] sm:$0xff]  ;;  %v340_v25 = vld [vmem:[%s501_s4] ss:$0 sm:$0xff] }
  0x15   :  { %v68_v16 = vpack.c.bf16 %v67_v14, %v67_v14 }
  0x17   :  { %139 = vmatpush.bf16.msra.mxu0 %v322_v4 }
  0x18   :  { %222 = vmatpush.bf16.msra.mxu1 %v330_v5 }
  0x1b   :  { %140 = vmatpush.bf16.msra.mxu0 %v321_v6 }
  0x1c   :  { %223 = vmatpush.bf16.msra.mxu1 %v329_v7 }
  0x1f   :  { %141 = vmatpush.bf16.msra.mxu0 %v320_v8 }
  0x20   :  { %224 = vmatpush.bf16.msra.mxu1 %v328_v9 }
  0x23   :  { %142 = vmatpush.bf16.msra.mxu0 %v319_v10 }
  0x24   :  { %225 = vmatpush.bf16.msra.mxu1 %v327_v11 }
  0x27   :  { %143 = vmatpush.bf16.msra.mxu0 %v318_v12 }
  0x28   :  { %226 = vmatpush.bf16.msra.mxu1 %v326_v17 }
  0x2b   :  { %144 = vmatpush.bf16.msra.mxu0 %v317_v15 }
  0x2c   :  { %227 = vmatpush.bf16.msra.mxu1 %v325_v18 }
  0x2e   :  { %145 = vmatmul.bf16.vlgmr.msra.gmra.mxu0 %v68_v16 }
  0xab   :  { %v146_v20 = vpop.f32.mrf.mxu0 }
  0xac   :  { %v147_v21 = vadd.f32 %v339_v19, %v146_v20 }
  0xae   :  { %v150_v22 = vmax.f32 %v147_v21, 0.0 }
  0xb0   :  { %v151_v23 = vpack.c.bf16 %v150_v22, %v150_v22 }
  0xb2   :  { %228 = vmatmul.bf16.vlgmr.msra.gmra.mxu1 %v151_v23 }
  0xb3   :  { %v148_v24 = vpop.f32.mrf.mxu0 }
 0x12f   :  { %v229_v26 = vpop.f32.mrf.mxu1 }
 0x130   :  { %v230_v27 = vadd.f32 %v340_v25, %v229_v26 }
 0x132   :  { %v233_v28 = vadd.f32 %v230_v27, %v66_v13 }
 0x134   :  { %234 = vst [vmem:[#allocation8] sm:$0xf] %v233_v28 }
 0x135   :  { %245 = dma.vmem_to_hbm [thread:$0]  %s241_s12, 64, %s243_s15, [#allocation4]  }
 0x137   :  { %v231_v29 = vpop.f32.mrf.mxu1 }
 0x138   :  { %441 = dma.done.wait [#allocation4], 64  }
 0x139   :  { %442 = vsyncadd [#allocation4], 4294967232 }
 0x13a   :  { %250 = vsyncpa [#allocation3], 1 }
 0x13b   :  { %251 = vsyncpa [#allocation6], 1 }
 0x13c   :  { %252 = vsyncpa [#allocation4], 1 }

</bundles_post_ra>
